<compile_context>
chip_gen: v7x
topology: tpu7x:2x2x1
jax: 0.10.0
libtpu: 0.0.40
codegen_flags: <defaults>
</compile_context>

<pallas_src>
import functools

import jax
import jax.numpy as jnp
from jax.experimental import pallas as pl
from jax.experimental.pallas import tpu as pltpu

LANES = 128
SUBLANES = 8
ACC_ROWS = 64                      # wide resident accumulator (8 vregs / core)
MAX_TILE_R = 8192                  # 8192 x 128 x f32 = 4 MiB per input block
VMEM_LIMIT_BYTES = 32 * 1024 * 1024
SMALL_INPUT_ELEMS = 128 * 1024     # below this a pure-jnp path is faster


def _round_up(x, m):
    return ((x + m - 1) // m) * m


def _num_tensorcores():
    """v7x exposes 2 TensorCores per chip; v5e/v6e have 1. Best-effort; a
    fallback of 1 is always correct (just no megacore split)."""
    try:
        dev = jax.devices()[0]
        if getattr(dev, "platform", "") != "tpu":
            return 1
        kind = (getattr(dev, "device_kind", "") or "").lower()
        if "v7" in kind or "tpu7" in kind:
            return 2
    except Exception:
        pass
    return 1


def _modulated_loss(x, t, gamma):
    """Stable BCEWithLogits (reduction='none') times |t - x|**gamma."""
    bce = jnp.maximum(x, 0.0) - x * t + jnp.log1p(jnp.exp(-jnp.abs(x)))
    d = t - x
    if gamma == 2.0:
        return bce * (d * d)
    if gamma == 1.0:
        return bce * jnp.abs(d)
    if gamma == 0.0:
        return bce
    return bce * jnp.abs(d) ** gamma


def _qfocal_jnp(pred, true, mask, gamma, reduction, binary_mask):
    """Reference / small-input path (pure jnp)."""
    x = pred.astype(jnp.float32).reshape(-1)
    t = true.astype(jnp.float32).reshape(-1)
    loss = _modulated_loss(x, t, gamma)
    if mask is not None:
        m = mask.astype(jnp.float32).reshape(-1)
        loss = loss * m
    total = jnp.sum(loss)
    if reduction == "sum":
        return total
    if mask is not None:
        count = jnp.sum(m) if binary_mask else jnp.sum((m > 0).astype(jnp.float32))
    else:
        count = jnp.float32(x.size)
    return total / jnp.maximum(jnp.float32(1.0), count)


def _qfocal_kernel(*refs, gamma, tile_r, acc_rows, steps_per_core, total_steps,
                   tail_valid, has_mask, need_count, need_step_guard,
                   binary_mask):
    if has_mask:
        pred_ref, true_ref, mask_ref = refs[0], refs[1], refs[2]
        out_refs = refs[3:]
    else:
        pred_ref, true_ref = refs[0], refs[1]
        mask_ref = None
        out_refs = refs[2:]
    lsum_ref = out_refs[0]
    csum_ref = out_refs[1] if need_count else None

    c = pl.program_id(0)
    i = pl.program_id(1)
    step = c * steps_per_core + i
    last = total_steps - 1

    @pl.when(i == 0)
    def _():
        lsum_ref[...] = jnp.zeros_like(lsum_ref)
        if need_count:
            csum_ref[...] = jnp.zeros_like(csum_ref)

    def _accumulate(masked_tail):
        x = pred_ref[...].astype(jnp.float32)
        t = true_ref[...].astype(jnp.float32)
        loss = _modulated_loss(x, t, gamma)

        cnt = None
        if has_mask:
            m = mask_ref[...].astype(jnp.float32)
            loss = loss * m
            if need_count:
                cnt = m if binary_mask else (m > 0.0).astype(jnp.float32)

        if masked_tail:
            # Only the final real grid step can contain invalid elements
            # (ragged tail / padding / stale rows of a partial boundary block).
            rows_iota = jax.lax.broadcasted_iota(jnp.int32, (tile_r, LANES), 0)
            if tail_valid % LANES == 0:
                valid = rows_iota < (tail_valid // LANES)      # 1 vcmp / vreg
            else:
                lanes_iota = jax.lax.broadcasted_iota(
                    jnp.int32, (tile_r, LANES), 1)
                valid = rows_iota * LANES + lanes_iota < tail_valid
            # where-select, never multiply: stale VMEM may hold NaN/Inf.
            loss = jnp.where(valid, loss, 0.0)
            if cnt is not None:
                cnt = jnp.where(valid, cnt, 0.0)

        # VPU-only accumulation into the resident (acc_rows,128) block; with
        # acc_rows=64 this is 8 independent vreg add chains. The single
        # cross-lane reduction happens once, in the wrapper.
        lsum_ref[...] += jnp.sum(
            loss.reshape(tile_r // acc_rows, acc_rows, LANES), axis=0)
        if cnt is not None:
            csum_ref[...] += jnp.sum(
                cnt.reshape(tile_r // acc_rows, acc_rows, LANES), axis=0)

    def _dispatch():
        if tail_valid is not None:
            @pl.when(step == last)
            def _():
                _accumulate(True)

            @pl.when(step != last)
            def _():
                _accumulate(False)
        else:
            _accumulate(False)

    if need_step_guard:
        # Skip the fully-clamped duplicate step(s) of the 2-core split.
        @pl.when(step < total_steps)
        def _():
            _dispatch()
    else:
        _dispatch()


def qfocal_loss(pred, true, mask=None, *, gamma=2.0, alpha=0.25,
                reduction="mean", binary_mask=False,
                min_pallas_elems=SMALL_INPUT_ELEMS):
    """QFocalLoss (BCEWithLogitsLoss base) forward as a Pallas TPU kernel.

    Returns a scalar matching the PyTorch module's 'mean' / 'sum' reductions.
    Inputs may be f32 / bf16 (streams are read in native dtype, cast in-kernel).
    Set binary_mask=True when the mask is guaranteed 0/1 to drop the (m>0)
    compare in the count accumulation.
    """
    # TODO(synk): the PyTorch module accepts an arbitrary `loss_fcn`; this
    # kernel hard-codes BCEWithLogitsLoss(reduction='none') as the base loss.
    del alpha  # stored but unused in the reference forward
    if reduction not in ("mean", "sum"):
        raise ValueError(f"unsupported reduction: {reduction}")

    gamma = float(gamma)
    n = int(pred.size)
    has_mask = mask is not None
    need_count = has_mask and reduction == "mean"

    streams = (pred, true) + ((mask,) if has_mask else ())
    itemsize = min(jnp.dtype(v.dtype).itemsize for v in streams)
    granule = SUBLANES * max(1, 4 // int(itemsize))   # 8 f32, 16 bf16, 32 int8
    chunk = granule * LANES

    if n == 0 or n < max(int(min_pallas_elems), chunk):
        # pallas_call fixed overhead dominates tiny tensors.
        return _qfocal_jnp(pred, true, mask, gamma, reduction, binary_mask)

    inputs = [pred.reshape(-1), true.reshape(-1)]
    if has_mask:
        inputs.append(mask.reshape(-1))

    if n % LANES:
        # Rare large-and-unaligned case: pad (a copy) up to whole rows.
        # TODO(synk): a fully copy-free ragged tail would need a 1-D Pallas
        # layout or a tiny jnp epilogue over the last <128 elements.
        padded = _round_up(n, chunk)
        inputs = [jnp.pad(v, (0, padded - n)) for v in inputs]
        rows = padded // LANES
    else:
        rows = n // LANES          # zero-copy: reshape below is a bitcast

    inputs = [v.reshape(rows, LANES) for v in inputs]

    # Floor the tile to the row granule so blocks never start outside the
    # array; the last block may be a partial boundary block (gated tail mask).
    tile_r = min(MAX_TILE_R, (rows // granule) * granule)
    acc_rows = ACC_ROWS if tile_r % ACC_ROWS == 0 else granule
    total_steps = (rows + tile_r - 1) // tile_r

    num_cores = _num_tensorcores() if total_steps > 1 else 1
    steps_per_core = (total_steps + num_cores - 1) // num_cores
    clamp_needed = num_cores * steps_per_core != total_steps

    covered = total_steps * tile_r * LANES
    tail_valid = None if covered == n else n - (total_steps - 1) * tile_r * LANES

    def in_map(c, i):
        step = c * steps_per_core + i
        if clamp_needed:
            step = jnp.minimum(step, total_steps - 1)
        return (step, 0)

    in_spec = pl.BlockSpec((tile_r, LANES), in_map)
    out_spec = pl.BlockSpec((acc_rows, LANES), lambda c, i: (c, 0))

    out_shapes = [jax.ShapeDtypeStruct((num_cores * acc_rows, LANES),
                                       jnp.float32)]
    out_specs = [out_spec]
    if need_count:
        out_shapes.append(jax.ShapeDtypeStruct((num_cores * acc_rows, LANES),
                                               jnp.float32))
        out_specs.append(out_spec)

    kernel = functools.partial(
        _qfocal_kernel,
        gamma=gamma, tile_r=tile_r, acc_rows=acc_rows,
        steps_per_core=steps_per_core, total_steps=total_steps,
        tail_valid=tail_valid, has_mask=has_mask, need_count=need_count,
        need_step_guard=clamp_needed, binary_mask=binary_mask)

    if num_cores > 1:
        # Shard the leading grid axis across the two v7x TensorCores.
        core_sem = getattr(pltpu, "CORE_PARALLEL", "parallel")
    else:
        core_sem = "arbitrary"

    outs = pl.pallas_call(
        kernel,
        out_shape=tuple(out_shapes),
        grid_spec=pltpu.PrefetchScalarGridSpec(
            num_scalar_prefetch=0,
            grid=(num_cores, steps_per_core),
            in_specs=[in_spec] * len(inputs),
            out_specs=tuple(out_specs),
        ),
        compiler_params=pltpu.CompilerParams(
            dimension_semantics=(core_sem, "arbitrary"),
            vmem_limit_bytes=VMEM_LIMIT_BYTES,
        ),
    )(*inputs)

    loss_sum = jnp.sum(outs[0])
    if reduction == "sum":
        return loss_sum

    # reduction == "mean"
    if has_mask:
        count = jnp.sum(outs[1])
    else:
        # TODO(synk): PyTorch raises for reduction='mean' with mask=None
        # ((None > 0) is a TypeError); we divide by numel instead.
        count = jnp.float32(n)
    return loss_sum / jnp.maximum(jnp.float32(1.0), count)


if __name__ == "__main__":
    key = jax.random.PRNGKey(0)
    k1, k2, k3 = jax.random.split(key, 3)

    def check(name, got, want, rtol=2e-5, atol=1e-5):
        got = jax.block_until_ready(got)
        want = jax.block_until_ready(want)
        assert jnp.allclose(got, want, rtol=rtol, atol=atol), (name, got, want)

    # --- small NCHW-like shape (module's typical usage), Pallas path forced --
    shape = (2, 4, 16, 16)
    pred = jax.random.normal(k1, shape, dtype=jnp.float32)       # logits
    true = jax.random.uniform(k2, shape, dtype=jnp.float32)      # soft targets
    mask = (jax.random.uniform(k3, shape) > 0.3).astype(jnp.float32)

    check("small/mean",
          qfocal_loss(pred, true, mask, reduction="mean", min_pallas_elems=0),
          _qfocal_jnp(pred, true, mask, 2.0, "mean", False))
    check("small/sum",
          qfocal_loss(pred, true, mask, reduction="sum", min_pallas_elems=0),
          _qfocal_jnp(pred, true, mask, 2.0, "sum", False))
    check("small/nomask-sum",
          qfocal_loss(pred, true, None, reduction="sum", min_pallas_elems=0),
          _qfocal_jnp(pred, true, None, 2.0, "sum", False))
    check("small/gamma1.5",
          qfocal_loss(pred, true, mask, gamma=1.5, reduction="mean",
                      min_pallas_elems=0),
          _qfocal_jnp(pred, true, mask, 1.5, "mean", False))

    # --- unaligned numel: pad + element-granular gated tail mask ------------
    shape_u = (5, 7, 31)                                          # 1085 elems
    pu = jax.random.normal(k1, shape_u, dtype=jnp.float32)
    tu = jax.random.uniform(k2, shape_u, dtype=jnp.float32)
    mu = (jax.random.uniform(k3, shape_u) > 0.4).astype(jnp.float32)
    check("unaligned/mean",
          qfocal_loss(pu, tu, mu, reduction="mean", min_pallas_elems=0),
          _qfocal_jnp(pu, tu, mu, 2.0, "mean", False))

    # --- 128-aligned but ragged rows: partial boundary block, 2 grid steps,
    #     row-granular tail mask on the last step only -----------------------
    shape_r = (9, 128)
    pr = jax.random.normal(k1, shape_r, dtype=jnp.float32)
    tr = jax.random.uniform(k2, shape_r, dtype=jnp.float32)
    mr = (jax.random.uniform(k3, shape_r) > 0.5).astype(jnp.float32)
    check("ragged-rows/mean",
          qfocal_loss(pr, tr, mr, reduction="mean", min_pallas_elems=0),
          _qfocal_jnp(pr, tr, mr, 2.0, "mean", False))

    # --- default small-input jnp fast path -----------------------------------
    check("small/default-fastpath",
          qfocal_loss(pred, true, mask, reduction="mean"),
          _qfocal_jnp(pred, true, mask, 2.0, "mean", False))

    # --- medium aligned shape: zero-copy inputs, multi-step grid, no tail ----
    shape_m = (8, 16, 128, 128)                                   # 2,097,152
    pm = jax.random.normal(k1, shape_m, dtype=jnp.float32)
    tm = jax.random.uniform(k2, shape_m, dtype=jnp.float32)
    mm = (jax.random.uniform(k3, shape_m) > 0.3).astype(jnp.float32)
    check("medium/mean", qfocal_loss(pm, tm, mm, reduction="mean"),
          _qfocal_jnp(pm, tm, mm, 2.0, "mean", False), rtol=1e-3, atol=1e-3)
    check("medium/sum", qfocal_loss(pm, tm, mm, reduction="sum"),
          _qfocal_jnp(pm, tm, mm, 2.0, "sum", False), rtol=1e-3, atol=1e-1)

    # --- bf16 streams (halves HBM traffic for this bandwidth-bound kernel) ---
    check("medium/bf16-sum",
          qfocal_loss(pm.astype(jnp.bfloat16), tm.astype(jnp.bfloat16), mm,
                      reduction="sum"),
          _qfocal_jnp(pm.astype(jnp.bfloat16), tm.astype(jnp.bfloat16), mm,
                      2.0, "sum", False), rtol=1e-3, atol=1e-1)

    print("KERNEL_OK")
</pallas_src>

<mosaic_0001>
module attributes {stable_mosaic.version = 11 : i64} {
  func.func @_qfocal_kernel(%arg0: i32, %arg1: i32, %arg2: memref<16x128xf32, #tpu.memory_space<vmem>>, %arg3: memref<16x128xf32, #tpu.memory_space<vmem>>, %arg4: memref<16x128xf32, #tpu.memory_space<vmem>>, %arg5: memref<8x128xf32, #tpu.memory_space<vmem>>, %arg6: memref<8x128xf32, #tpu.memory_space<vmem>>) attributes {dimension_semantics = [#tpu.dimension_semantics<arbitrary>, #tpu.dimension_semantics<arbitrary>], iteration_bounds = array<i64: 1, 1>, scalar_prefetch = 0 : i64, scratch_operands = 0 : i64, tpu.core_type = #tpu.core_type<tc>, window_params = [{transform_indices = @transform_0, window_bounds = array<i64: 16, 128>}, {transform_indices = @transform_1, window_bounds = array<i64: 16, 128>}, {transform_indices = @transform_2, window_bounds = array<i64: 16, 128>}, {transform_indices = @transform_3, window_bounds = array<i64: 8, 128>}, {transform_indices = @transform_4, window_bounds = array<i64: 8, 128>}]} {
    %c0_i32 = arith.constant 0 : i32
    %0 = arith.cmpi eq, %arg1, %c0_i32 : i32
    %1 = arith.extui %0 : i1 to i32
    %c0_i32_0 = arith.constant 0 : i32
    %2 = arith.cmpi ne, %1, %c0_i32_0 : i32
    scf.if %2 {
      %cst_18 = arith.constant 0.000000e+00 : f32
      %34 = vector.broadcast %cst_18 : f32 to vector<8x128xf32>
      %c0_19 = arith.constant 0 : index
      %c0_20 = arith.constant 0 : index
      %35 = vector.load %arg5[%c0_19, %c0_20] : memref<8x128xf32, #tpu.memory_space<vmem>>, vector<8x128xf32>
      tpu.vector_store %arg5[%c0_19, %c0_20], %34 {strides = array<i32>} : memref<8x128xf32, #tpu.memory_space<vmem>>, vector<8x128xf32>,
      %cst_21 = arith.constant 0.000000e+00 : f32
      %36 = vector.broadcast %cst_21 : f32 to vector<8x128xf32>
      %c0_22 = arith.constant 0 : index
      %c0_23 = arith.constant 0 : index
      %37 = vector.load %arg6[%c0_22, %c0_23] : memref<8x128xf32, #tpu.memory_space<vmem>>, vector<8x128xf32>
      tpu.vector_store %arg6[%c0_22, %c0_23], %36 {strides = array<i32>} : memref<8x128xf32, #tpu.memory_space<vmem>>, vector<8x128xf32>,
    } else {
    }
    %c0 = arith.constant 0 : index
    %c0_1 = arith.constant 0 : index
    %3 = vector.load %arg2[%c0, %c0_1] : memref<16x128xf32, #tpu.memory_space<vmem>>, vector<16x128xf32>
    %c0_2 = arith.constant 0 : index
    %c0_3 = arith.constant 0 : index
    %4 = vector.load %arg3[%c0_2, %c0_3] : memref<16x128xf32, #tpu.memory_space<vmem>>, vector<16x128xf32>
    %cst = arith.constant 0.000000e+00 : f32
    %5 = vector.broadcast %cst : f32 to vector<16x128xf32>
    %6 = arith.maximumf %3, %5 : vector<16x128xf32>
    %7 = arith.mulf %3, %4 : vector<16x128xf32>
    %8 = arith.subf %6, %7 : vector<16x128xf32>
    %9 = math.absf %3 : vector<16x128xf32>
    %cst_4 = arith.constant 0.000000e+00 : f32
    %10 = vector.broadcast %cst_4 : f32 to vector<16x128xf32>
    %11 = arith.subf %10, %9 : vector<16x128xf32>
    %12 = math.exp %11 : vector<16x128xf32>
    %13 = math.log1p %12 : vector<16x128xf32>
    %14 = arith.addf %8, %13 : vector<16x128xf32>
    %15 = arith.subf %4, %3 : vector<16x128xf32>
    %16 = arith.mulf %15, %15 : vector<16x128xf32>
    %17 = arith.mulf %14, %16 : vector<16x128xf32>
    %c0_5 = arith.constant 0 : index
    %c0_6 = arith.constant 0 : index
    %18 = vector.load %arg4[%c0_5, %c0_6] : memref<16x128xf32, #tpu.memory_space<vmem>>, vector<16x128xf32>
    %19 = arith.mulf %17, %18 : vector<16x128xf32>
    %cst_7 = arith.constant 0.000000e+00 : f32
    %20 = vector.broadcast %cst_7 : f32 to vector<16x128xf32>
    %21 = arith.cmpf ogt, %18, %20 : vector<16x128xf32>
    %22 = arith.extui %21 : vector<16x128xi1> to vector<16x128xi32>
    %23 = arith.sitofp %22 : vector<16x128xi32> to vector<16x128xf32>
    %c0_8 = arith.constant 0 : index
    %c0_9 = arith.constant 0 : index
    %24 = vector.load %arg5[%c0_8, %c0_9] : memref<8x128xf32, #tpu.memory_space<vmem>>, vector<8x128xf32>
    %25 = vector.shape_cast %19 : vector<16x128xf32> to vector<2x8x128xf32>
    %cst_10 = arith.constant dense<0.000000e+00> : vector<8x128xf32>
    %26 = vector.multi_reduction <add>, %25, %cst_10 [0] : vector<2x8x128xf32> to vector<8x128xf32>
    %27 = arith.addf %24, %26 : vector<8x128xf32>
    %c0_11 = arith.constant 0 : index
    %c0_12 = arith.constant 0 : index
    %28 = vector.load %arg5[%c0_11, %c0_12] : memref<8x128xf32, #tpu.memory_space<vmem>>, vector<8x128xf32>
    tpu.vector_store %arg5[%c0_11, %c0_12], %27 {strides = array<i32>} : memref<8x128xf32, #tpu.memory_space<vmem>>, vector<8x128xf32>,
    %c0_13 = arith.constant 0 : index
    %c0_14 = arith.constant 0 : index
    %29 = vector.load %arg6[%c0_13, %c0_14] : memref<8x128xf32, #tpu.memory_space<vmem>>, vector<8x128xf32>
    %30 = vector.shape_cast %23 : vector<16x128xf32> to vector<2x8x128xf32>
    %cst_15 = arith.constant dense<0.000000e+00> : vector<8x128xf32>
    %31 = vector.multi_reduction <add>, %30, %cst_15 [0] : vector<2x8x128xf32> to vector<8x128xf32>
    %32 = arith.addf %29, %31 : vector<8x128xf32>
    %c0_16 = arith.constant 0 : index
    %c0_17 = arith.constant 0 : index
    %33 = vector.load %arg6[%c0_16, %c0_17] : memref<8x128xf32, #tpu.memory_space<vmem>>, vector<8x128xf32>
    tpu.vector_store %arg6[%c0_16, %c0_17], %32 {strides = array<i32>} : memref<8x128xf32, #tpu.memory_space<vmem>>, vector<8x128xf32>,
    return
  }
  func.func @transform_0(%arg0: i32, %arg1: i32) -> (i32, i32) {
    %c1_i32 = arith.constant 1 : i32
    %0 = arith.muli %arg0, %c1_i32 : i32
    %1 = arith.addi %0, %arg1 : i32
    %c0_i32 = arith.constant 0 : i32
    %c0_i32_0 = arith.constant 0 : i32
    return %1, %c0_i32 : i32, i32
  }
  func.func @transform_1(%arg0: i32, %arg1: i32) -> (i32, i32) {
    %c1_i32 = arith.constant 1 : i32
    %0 = arith.muli %arg0, %c1_i32 : i32
    %1 = arith.addi %0, %arg1 : i32
    %c0_i32 = arith.constant 0 : i32
    %c0_i32_0 = arith.constant 0 : i32
    return %1, %c0_i32 : i32, i32
  }
  func.func @transform_2(%arg0: i32, %arg1: i32) -> (i32, i32) {
    %c1_i32 = arith.constant 1 : i32
    %0 = arith.muli %arg0, %c1_i32 : i32
    %1 = arith.addi %0, %arg1 : i32
    %c0_i32 = arith.constant 0 : i32
    %c0_i32_0 = arith.constant 0 : i32
    return %1, %c0_i32 : i32, i32
  }
  func.func @transform_3(%arg0: i32, %arg1: i32) -> (i32, i32) {
    %c0_i32 = arith.constant 0 : i32
    %c0_i32_0 = arith.constant 0 : i32
    return %arg0, %c0_i32 : i32, i32
  }
  func.func @transform_4(%arg0: i32, %arg1: i32) -> (i32, i32) {
    %c0_i32 = arith.constant 0 : i32
    %c0_i32_0 = arith.constant 0 : i32
    return %arg0, %c0_i32 : i32, i32
  }
}

</mosaic_0001>

<bundles_post_ra>
// kernel: tpu_custom_call.1
= control target key start
LH: loop header
LB: loop body
LE: loop exit
PB: predicated region body
PF: predicated region fallthrough
CT: control target
= control target key end

     0   :  { %10 = vsyncpa [#allocation3], 0  ;;  %s428_s0 = inlined_call_operand.hbm [shape: f32[16,128], index: 0, kind: input, shape index: {}]   ;;  %s429_s1 = inlined_call_operand.hbm [shape: f32[16,128], index: 1, kind: input, shape index: {}]   ;;  %s430_s2 = inlined_call_operand.hbm [shape: f32[16,128], index: 2, kind: input, shape index: {}]   ;;  %s431_s3 = inlined_call_operand.hbm [shape: f32[8,128], index: 3, kind: output, shape index: {0}]   ;;  %s432_s4 = inlined_call_operand.hbm [shape: f32[8,128], index: 4, kind: output, shape index: {1}]  }
   0x1   :  { %11 = vsyncpa [#allocation6], 0 }
   0x2   :  { %12 = vsyncpa [#allocation4], 0 }
   0x3   :  { %13 = vsyncpa [#allocation10], 0  ;;  %s311_s15 = smov [#allocation5]   ;;  %s312_s17 = smov [#allocation2]  }
   0x4   :  { %s39_s16 = sshll.u32 %s311_s15, 4  ;;  %s23_s18 = sshll.u32 %s312_s17, 4  ;;  %s40_s16 = int_to_ptr.vmem [resolvable:$true] %s39_s16  ;;  %s344_s18 = int_to_ptr.vmem [resolvable:$true] %s23_s18 }
   0x5   :  { %s193_s21 = scalar_lea.hbm %s429_s1, 256 }
   0x6   :  { %p194_p0 = scmp.ne.s32.totalorder %s429_s1, %s193_s21  ;;  %p197_p1 = scmp.lt.u32.totalorder %s193_s21, %s429_s1 }
   0x8   :  { %p199_p2 = pnand %p197_p1, %p194_p0 }
   0xa   :  { %202 = shalt.err (!%p199_p2)
}
   0xb   :  { %s203_s26 = scalar_lea.vmem %s40_s16, 256  ;;  %p208_p4 = scmp.lt.s32.totalorder %s40_s16, %s40_s16 }
   0xc   :  { %p204_p3 = scmp.ne.s32.totalorder %s40_s16, %s203_s26  ;;  %p209_p5 = scmp.lt.s32.totalorder %s203_s26, %s203_s26 }
   0xe   :  { %p210_p6 = por %p209_p5, %p208_p4 }
  0x10   :  { %p211_p7 = pnand %p210_p6, %p204_p3 }
  0x12   :  { %214 = shalt.err (!%p211_p7)
}
  0x13   :  { %s313_s27 = smov 128   ;;  %s314_s28 = smov 8  }
  0x14   :  { %45 = dma.hbm_to_vmem [thread:$0]  %s429_s1, 256, %s40_s16, [#allocation6], %s313_s27, %s313_s27, %s314_s28  }
  0x15   :  { %s215_s7 = scalar_lea.hbm %s428_s0, 256 }
  0x16   :  { %p216_p8 = scmp.ne.s32.totalorder %s428_s0, %s215_s7  ;;  %p219_p9 = scmp.lt.u32.totalorder %s215_s7, %s428_s0 }
  0x18   :  { %p221_p10 = pnand %p219_p9, %p216_p8 }
  0x1a   :  { %224 = shalt.err (!%p221_p10)
}
  0x1b   :  { %s225_s12 = scalar_lea.vmem %s344_s18, 256  ;;  %p230_p12 = scmp.lt.s32.totalorder %s344_s18, %s344_s18 }
  0x1c   :  { %p226_p11 = scmp.ne.s32.totalorder %s344_s18, %s225_s12  ;;  %p231_p13 = scmp.lt.s32.totalorder %s225_s12, %s225_s12 }
  0x1e   :  { %p232_p0 = por %p231_p13, %p230_p12 }
  0x20   :  { %p233_p1 = pnand %p232_p0, %p226_p11 }
  0x22   :  { %236 = shalt.err (!%p233_p1)
}
  0x23   :  { %29 = dma.hbm_to_vmem [thread:$0]  %s428_s0, 256, %s344_s18, [#allocation3], %s313_s27, %s313_s27, %s314_s28  }
  0x24   :  { %s315_s14 = smov [#allocation7]   ;;  %s237_s19 = scalar_lea.hbm %s430_s2, 256 }
  0x25   :  { %s55_s15 = sshll.u32 %s315_s14, 4  ;;  %p238_p2 = scmp.ne.s32.totalorder %s430_s2, %s237_s19  ;;  %s56_s15 = int_to_ptr.vmem [resolvable:$true] %s55_s15 }
  0x26   :  { %p241_p3 = scmp.lt.u32.totalorder %s237_s19, %s430_s2 }
  0x28   :  { %p243_p4 = pnand %p241_p3, %p238_p2 }
  0x2a   :  { %246 = shalt.err (!%p243_p4)
}
  0x2b   :  { %s247_s24 = scalar_lea.vmem %s56_s15, 256  ;;  %p252_p6 = scmp.lt.s32.totalorder %s56_s15, %s56_s15 }
  0x2c   :  { %p248_p5 = scmp.ne.s32.totalorder %s56_s15, %s247_s24  ;;  %p253_p7 = scmp.lt.s32.totalorder %s247_s24, %s247_s24 }
  0x2e   :  { %p254_p8 = por %p253_p7, %p252_p6 }
  0x30   :  { %p255_p9 = pnand %p254_p8, %p248_p5 }
  0x32   :  { %258 = shalt.err (!%p255_p9)
}
  0x33   :  { %61 = dma.hbm_to_vmem [thread:$0]  %s430_s2, 256, %s56_s15, [#allocation6], %s313_s27, %s313_s27, %s314_s28  }
  0x34   :  { %303 = dma.done.wait [#allocation3], 256  }
  0x35   :  { %304 = vsyncadd [#allocation3], 4294967040 }
  0x36   :  { %305 = dma.done.wait [#allocation6], 512  }
  0x37   :  { %306 = vsyncadd [#allocation6], 4294966784  ;;  %v83_v0 = vld [vmem:[#allocation2] sm:$0xff]  ;;  %v84_v1 = vld [vmem:[#allocation2 + $0x8] sm:$0xff]  ;;  %v316_v9 = vmov 0.0   ;;  %s317_s2 = smov [#allocation9]  }
  0x38   :  { %v93_v2 = vand.u32 2147483647, %v83_v0  ;;  %v396_v3 = vld [vmem:[#allocation7] sm:$0xff]  ;;  %v94_v4 = vand.u32 2147483647, %v84_v1  ;;  %v398_v5 = vld [vmem:[#allocation7 + $0x8] sm:$0xff] }
  0x39   :  { %vm131_vm0 = vcmp.gt.f32.partialorder %v396_v3, 0.0  ;;  %vm132_vm1 = vcmp.gt.f32.partialorder %v398_v5, 0.0  ;;  %s161_s25 = sshll.u32 %s317_s2, 4  ;;  %s162_s25 = int_to_ptr.vmem [resolvable:$true] %s161_s25 }
  0x3a   :  { %v95_v6 = vsub.f32 0.0, %v93_v2  ;;  %v96_v7 = vsub.f32 0.0, %v94_v4  ;;  %v175_v10 = vsel %vm131_vm0, 1.0, %v316_v9  ;;  %v176_v11 = vsel %vm132_vm1, 1.0, %v316_v9  ;;  %s259_s26 = scalar_lea.vmem %s162_s25, 128  ;;  %p264_p11 = scmp.lt.s32.totalorder %s162_s25, %s162_s25 }
  0x3b   :  { %v142_v13 = vadd.f32 %v176_v11, %v175_v10  ;;  %p260_p10 = scmp.ne.s32.totalorder %s162_s25, %s259_s26  ;;  %p265_p12 = scmp.lt.s32.totalorder %s259_s26, %s259_s26 }
  0x3c   :  { %v97_v8 = vmul.f32 1.442695, %v95_v6  ;;  %v99_v12 = vmul.f32 1.442695, %v96_v7 }
  0x3d   :  { %144 = vst [vmem:[#allocation9] sm:$0xff] %v142_v13  ;;  %p266_p13 = por %p265_p12, %p264_p11 }
  0x3e   :  { %185 = vpow2.f32 %v97_v8 }
  0x3f   :  { %187 = vpow2.f32 %v99_v12  ;;  %p267_p0 = pnand %p266_p13, %p260_p10 }
  0x41   :  { %270 = shalt.err (!%p267_p0)
}
  0x42   :  { %s271_s29 = scalar_lea.hbm %s432_s4, 128 }
  0x43   :  { %p272_p1 = scmp.ne.s32.totalorder %s432_s4, %s271_s29  ;;  %p275_p2 = scmp.lt.u32.totalorder %s271_s29, %s432_s4 }
  0x45   :  { %p277_p3 = pnand %p275_p2, %p272_p1 }
  0x47   :  { %280 = shalt.err (!%p277_p3)
}
  0x48   :  { %164 = dma.vmem_to_hbm [thread:$0]  %s162_s25, 128, %s432_s4, [#allocation10]   ;;  %v186_v14 = vpop.eup %185  ;;  %v85_v20 = vld [vmem:[#allocation5] sm:$0xff]  ;;  %v86_v21 = vld [vmem:[#allocation5 + $0x8] sm:$0xff]  ;;  %v87_v23 = vmax.f32 %v83_v0, 0.0  ;;  %v88_v27 = vmax.f32 %v84_v1, 0.0 }
  0x49   :  { %v188_v15 = vpop.eup %187  ;;  %v101_v16 = vadd.f32 1.0, %v186_v14  ;;  %v104_v18 = vmul.f32 -0.5, %v186_v14  ;;  %v89_v24 = vmul.f32 %v85_v20, %v83_v0  ;;  %v107_v25 = vand.u32 2147483647, %v186_v14  ;;  %s318_s4 = smov [#allocation8]  }
  0x4a   :  { %v110_v17 = vadd.f32 1.0, %v188_v15  ;;  %v113_v19 = vmul.f32 -0.5, %v188_v15  ;;  %v90_v28 = vmul.f32 %v86_v21, %v84_v1  ;;  %v116_v29 = vand.u32 2147483647, %v188_v15  ;;  %s151_s10 = sshll.u32 %s318_s4, 4  ;;  %s152_s10 = int_to_ptr.vmem [resolvable:$true] %s151_s10 }
  0x4b   :  { %189 = vlog2.f32 %v101_v16  ;;  %v105_v22 = vadd.f32 1.0, %v104_v18  ;;  %v121_v30 = vsub.f32 %v85_v20, %v83_v0  ;;  %v122_v32 = vsub.f32 %v86_v21, %v84_v1  ;;  %s281_s11 = scalar_lea.vmem %s152_s10, 128  ;;  %p286_p5 = scmp.lt.s32.totalorder %s152_s10, %s152_s10 }
  0x4c   :  { %191 = vlog2.f32 %v110_v17  ;;  %v114_v26 = vadd.f32 1.0, %v113_v19  ;;  %v91_v34 = vsub.f32 %v87_v23, %v89_v24  ;;  %vm108_vm2 = vcmp.lt.f32.partialorder %v107_v25, 0.0004427343  ;;  %p282_p4 = scmp.ne.s32.totalorder %s152_s10, %s281_s11  ;;  %p287_p6 = scmp.lt.s32.totalorder %s281_s11, %s281_s11 }
  0x4d   :  { %v106_v31 = vmul.f32 %v186_v14, %v105_v22  ;;  %v92_v37 = vsub.f32 %v88_v27, %v90_v28  ;;  %vm117_vm3 = vcmp.lt.f32.partialorder %v116_v29, 0.0004427343  ;;  %v123_v40 = vmul.f32 %v121_v30, %v121_v30 }
  0x4e   :  { %v115_v35 = vmul.f32 %v188_v15, %v114_v26  ;;  %v124_v42 = vmul.f32 %v122_v32, %v122_v32  ;;  %p288_p7 = por %p287_p6, %p286_p5 }
  0x50   :  { %p289_p8 = pnand %p288_p7, %p282_p4 }
  0x55   :  { %v190_v33 = vpop.eup %189 }
  0x56   :  { %v192_v36 = vpop.eup %191  ;;  %v103_v38 = vmul.f32 0.6931472, %v190_v33 }
  0x57   :  { %v112_v39 = vmul.f32 0.6931472, %v192_v36 }
  0x58   :  { %v109_v41 = vsel %vm108_vm2, %v106_v31, %v103_v38 }
  0x59   :  { %v118_v43 = vsel %vm117_vm3, %v115_v35, %v112_v39  ;;  %v119_v44 = vadd.f32 %v109_v41, %v91_v34 }
  0x5a   :  { %v120_v45 = vadd.f32 %v118_v43, %v92_v37 }
  0x5b   :  { %v125_v46 = vmul.f32 %v123_v40, %v119_v44 }
  0x5c   :  { %v126_v47 = vmul.f32 %v124_v42, %v120_v45 }
  0x5d   :  { %v129_v48 = vmul.f32 %v396_v3, %v125_v46 }
  0x5e   :  { %v130_v49 = vmul.f32 %v398_v5, %v126_v47 }
  0x60   :  { %v138_v50 = vadd.f32 %v130_v49, %v129_v48 }
  0x62   :  { %140 = vst [vmem:[#allocation8] sm:$0xff] %v138_v50 }
  0x63   :  { %292 = shalt.err (!%p289_p8)
}
  0x64   :  { %s293_s13 = scalar_lea.hbm %s431_s3, 128 }
  0x65   :  { %p294_p9 = scmp.ne.s32.totalorder %s431_s3, %s293_s13  ;;  %p297_p10 = scmp.lt.u32.totalorder %s293_s13, %s431_s3 }
  0x67   :  { %p299_p11 = pnand %p297_p10, %p294_p9 }
  0x69   :  { %302 = shalt.err (!%p299_p11)
}
  0x6a   :  { %154 = dma.vmem_to_hbm [thread:$0]  %s152_s10, 128, %s431_s3, [#allocation4]  }
  0x6b   :  { %307 = dma.done.wait [#allocation4], 128  }
  0x6c   :  { %308 = vsyncadd [#allocation4], 4294967168 }
  0x6d   :  { %309 = dma.done.wait [#allocation10], 128  }
  0x6e   :  { %310 = vsyncadd [#allocation10], 4294967168 }
  0x6f   :  { %171 = vsyncpa [#allocation3], 1 }
  0x70   :  { %172 = vsyncpa [#allocation6], 1 }
  0x71   :  { %173 = vsyncpa [#allocation4], 1 }
  0x72   :  { %174 = vsyncpa [#allocation10], 1 }

</bundles_post_ra>
